<compile_context>
chip_gen: v7x
topology: tpu7x:2x2x1
jax: 0.10.0
libtpu: 0.0.40
codegen_flags: <defaults>
</compile_context>

<pallas_src>
import jax
import jax.numpy as jnp
from jax.experimental import pallas as pl
from jax.experimental.pallas import tpu as pltpu

EPS = 1e-5

_LANE_TILE_MAX = 2048          # lanes per block (multiple of 128)
_BLOCK_BYTE_BUDGET = 2 << 20   # ~2 MiB per data block (per buffer)


def _frozen_bn_kernel(scale_ref, bias_ref, x_ref, o_ref):
    # scale/bias refs: (TM, 1) float32 ; x/o refs: (TM, TN) in x dtype.
    x = x_ref[...].astype(jnp.float32)
    o_ref[...] = (x * scale_ref[...] + bias_ref[...]).astype(o_ref.dtype)


def frozen_batch_norm_2d(x, weight, bias, running_mean, running_var,
                         *, row_tile=None, lane_tile=None):
    """x: (N, C, H, W). weight/bias/running_mean/running_var: (C,).

    row_tile / lane_tile are test-only overrides (must respect the TPU
    (8, 128) block constraints); leave None for the auto-tuned tiling.
    """
    N, C, H, W = x.shape
    NC, HW = N * C, H * W
    itemsize = jnp.dtype(x.dtype).itemsize

    # --- precompute per-channel scale / bias in fp32 (trivial, plain JAX) ----
    w = weight.astype(jnp.float32)
    b = bias.astype(jnp.float32)
    rm = running_mean.astype(jnp.float32)
    rv = running_var.astype(jnp.float32)
    scale_c = w * jax.lax.rsqrt(rv + EPS)            # (C,)
    bias_c = b - rm * scale_c                        # (C,)

    # Per-(n, c)-row params, shape (NC, 1); row r = n*C + c matches the
    # contiguous reshape of NCHW to (N*C, H*W).  Tiny (NC * 4 bytes).
    scale_rows = jnp.tile(scale_c, (N,)).reshape(NC, 1)
    bias_rows = jnp.tile(bias_c, (N,)).reshape(NC, 1)

    # --- free relayout: contiguous dim-merge, no copy ------------------------
    x2d = x.reshape(NC, HW)

    # --- tile sizing (no padding: ragged edges handled by cdiv grid) ---------
    if lane_tile is None:
        TN = HW if HW <= _LANE_TILE_MAX else _LANE_TILE_MAX
    else:
        TN = min(lane_tile, HW)

    budget_elems = max(1, _BLOCK_BYTE_BUDGET // itemsize)
    max_tm = max(8, (budget_elems // max(TN, 1)) // 8 * 8)
    if row_tile is None:
        TM = NC if NC <= max_tm else max_tm
    else:
        TM = min(row_tile, NC)

    grid = (pl.cdiv(NC, TM), pl.cdiv(HW, TN))

    # --- VMEM budget: double-buffered in + out + tiny params -----------------
    block_bytes = TM * TN * itemsize
    vmem_bytes = 2 * 2 * block_bytes + 2 * 2 * TM * 4 * 2
    vmem_limit = int(min(max(vmem_bytes * 5 // 4 + (2 << 20), 16 << 20), 32 << 20))

    data_spec = pl.BlockSpec((TM, TN), lambda i, j: (i, j))
    par_spec = pl.BlockSpec((TM, 1), lambda i, j: (i, 0))

    out2d = pl.pallas_call(
        _frozen_bn_kernel,
        out_shape=jax.ShapeDtypeStruct((NC, HW), x.dtype),
        grid_spec=pltpu.PrefetchScalarGridSpec(
            num_scalar_prefetch=0,
            grid=grid,
            in_specs=[par_spec, par_spec, data_spec],
            out_specs=data_spec,
        ),
        compiler_params=pltpu.CompilerParams(
            dimension_semantics=("parallel", "parallel"),
            vmem_limit_bytes=vmem_limit,
        ),
    )(scale_rows, bias_rows, x2d)

    return out2d.reshape(N, C, H, W)   # free reshape (same contiguous layout)


def _reference(x, weight, bias, running_mean, running_var):
    w = weight.reshape(1, -1, 1, 1).astype(jnp.float32)
    b = bias.reshape(1, -1, 1, 1).astype(jnp.float32)
    rv = running_var.reshape(1, -1, 1, 1).astype(jnp.float32)
    rm = running_mean.reshape(1, -1, 1, 1).astype(jnp.float32)
    scale = w * jax.lax.rsqrt(rv + EPS)
    bias_ = b - rm * scale
    return x.astype(jnp.float32) * scale + bias_


def _make_params(key, C):
    kw, kb, km, kv = jax.random.split(key, 4)
    weight = 1.0 + 0.1 * jax.random.normal(kw, (C,), dtype=jnp.float32)
    bias = 0.1 * jax.random.normal(kb, (C,), dtype=jnp.float32)
    running_mean = 0.2 * jax.random.normal(km, (C,), dtype=jnp.float32)
    running_var = jnp.abs(1.0 + 0.1 * jax.random.normal(kv, (C,), dtype=jnp.float32))
    return weight, bias, running_mean, running_var


if __name__ == "__main__":
    key = jax.random.PRNGKey(0)
    kx1, kp1, kx2, kp2, kx3, kp3 = jax.random.split(key, 6)

    # Case 1: fp32, lane-aligned spatial (16*16 = 256), single block.
    N, C, H, W = 2, 4, 16, 16
    x = jax.random.normal(kx1, (N, C, H, W), dtype=jnp.float32)
    weight, bias, running_mean, running_var = _make_params(kp1, C)
    out = jax.block_until_ready(
        frozen_batch_norm_2d(x, weight, bias, running_mean, running_var))
    ref = _reference(x, weight, bias, running_mean, running_var)
    assert out.shape == (N, C, H, W)
    assert jnp.allclose(out, ref, atol=1e-5, rtol=1e-5), "fp32 mismatch vs reference"

    # Case 2: bf16 I/O, ragged spatial (7*7 = 49 lanes) -> masked-store tail.
    N2, C2, H2, W2 = 2, 5, 7, 7
    x2 = jax.random.normal(kx2, (N2, C2, H2, W2), dtype=jnp.bfloat16)
    w2, b2, rm2, rv2 = _make_params(kp2, C2)
    out2 = jax.block_until_ready(frozen_batch_norm_2d(x2, w2, b2, rm2, rv2))
    assert out2.dtype == jnp.bfloat16 and out2.shape == (N2, C2, H2, W2)
    ref2 = _reference(x2, w2, b2, rm2, rv2)
    assert jnp.allclose(out2.astype(jnp.float32), ref2, atol=2e-2, rtol=2e-2), \
        "bf16 mismatch vs reference"

    # Case 3: force a multi-block grid with ragged edge blocks on BOTH axes
    # (NC = 10 rows with row_tile 8, HW = 240 lanes with lane_tile 128) to
    # exercise the no-padding partial-block path.
    N3, C3, H3, W3 = 2, 5, 12, 20
    x3 = jax.random.normal(kx3, (N3, C3, H3, W3), dtype=jnp.float32)
    w3, b3, rm3, rv3 = _make_params(kp3, C3)
    out3 = jax.block_until_ready(
        frozen_batch_norm_2d(x3, w3, b3, rm3, rv3, row_tile=8, lane_tile=128))
    ref3 = _reference(x3, w3, b3, rm3, rv3)
    assert out3.shape == (N3, C3, H3, W3)
    assert jnp.allclose(out3, ref3, atol=1e-5, rtol=1e-5), "ragged-grid mismatch vs reference"

    print("KERNEL_OK")
</pallas_src>

<mosaic_0001>
module attributes {stable_mosaic.version = 11 : i64} {
  func.func @_frozen_bn_kernel(%arg0: i32, %arg1: i32, %arg2: memref<8x1xf32, #tpu.memory_space<vmem>>, %arg3: memref<8x1xf32, #tpu.memory_space<vmem>>, %arg4: memref<8x256xf32, #tpu.memory_space<vmem>>, %arg5: memref<8x256xf32, #tpu.memory_space<vmem>>) attributes {dimension_semantics = [#tpu.dimension_semantics<parallel>, #tpu.dimension_semantics<parallel>], iteration_bounds = array<i64: 1, 1>, scalar_prefetch = 0 : i64, scratch_operands = 0 : i64, tpu.core_type = #tpu.core_type<tc>, window_params = [{transform_indices = @transform_0, window_bounds = array<i64: 8, 1>}, {transform_indices = @transform_1, window_bounds = array<i64: 8, 1>}, {transform_indices = @transform_2, window_bounds = array<i64: 8, 256>}, {transform_indices = @transform_3, window_bounds = array<i64: 8, 256>}]} {
    %c0 = arith.constant 0 : index
    %c0_0 = arith.constant 0 : index
    %0 = vector.load %arg4[%c0, %c0_0] : memref<8x256xf32, #tpu.memory_space<vmem>>, vector<8x256xf32>
    %c0_1 = arith.constant 0 : index
    %c0_2 = arith.constant 0 : index
    %1 = vector.load %arg2[%c0_1, %c0_2] : memref<8x1xf32, #tpu.memory_space<vmem>>, vector<8x1xf32>
    %2 = vector.broadcast %1 : vector<8x1xf32> to vector<8x256xf32>
    %3 = arith.mulf %0, %2 : vector<8x256xf32>
    %c0_3 = arith.constant 0 : index
    %c0_4 = arith.constant 0 : index
    %4 = vector.load %arg3[%c0_3, %c0_4] : memref<8x1xf32, #tpu.memory_space<vmem>>, vector<8x1xf32>
    %5 = vector.broadcast %4 : vector<8x1xf32> to vector<8x256xf32>
    %6 = arith.addf %3, %5 : vector<8x256xf32>
    %c0_5 = arith.constant 0 : index
    %c0_6 = arith.constant 0 : index
    %7 = vector.load %arg5[%c0_5, %c0_6] : memref<8x256xf32, #tpu.memory_space<vmem>>, vector<8x256xf32>
    tpu.vector_store %arg5[%c0_5, %c0_6], %6 {strides = array<i32>} : memref<8x256xf32, #tpu.memory_space<vmem>>, vector<8x256xf32>,
    return
  }
  func.func @transform_0(%arg0: i32, %arg1: i32) -> (i32, i32) {
    %c0_i32 = arith.constant 0 : i32
    %c0_i32_0 = arith.constant 0 : i32
    return %arg0, %c0_i32 : i32, i32
  }
  func.func @transform_1(%arg0: i32, %arg1: i32) -> (i32, i32) {
    %c0_i32 = arith.constant 0 : i32
    %c0_i32_0 = arith.constant 0 : i32
    return %arg0, %c0_i32 : i32, i32
  }
  func.func @transform_2(%arg0: i32, %arg1: i32) -> (i32, i32) {
    %c0_i32 = arith.constant 0 : i32
    return %arg0, %arg1 : i32, i32
  }
  func.func @transform_3(%arg0: i32, %arg1: i32) -> (i32, i32) {
    %c0_i32 = arith.constant 0 : i32
    return %arg0, %arg1 : i32, i32
  }
}

</mosaic_0001>

<bundles_post_ra>
// kernel: tpu_custom_call.1
= control target key start
LH: loop header
LB: loop body
LE: loop exit
PB: predicated region body
PF: predicated region fallthrough
CT: control target
= control target key end

     0   :  { %s122_s0 = inlined_call_operand.vmem [shape: f32[8,1], index: 0, kind: input, shape index: {}]   ;;  %s123_s1 = inlined_call_operand.vmem [shape: f32[8,1], index: 1, kind: input, shape index: {}]   ;;  %s124_s2 = inlined_call_operand.vmem [shape: f32[8,256], index: 2, kind: input, shape index: {}]   ;;  %s125_s3 = inlined_call_operand.hbm [shape: f32[8,256], index: 3, kind: output, shape index: {}]  }
   0x1   :  { %v17_v0 = vld [vmem:[%s122_s0] sm:$0xff] }
   0x2   :  { %8 = vsyncpa [#allocation3], 0  ;;  %v76_v1 = vmov 0   ;;  %v25_v2 = vld [vmem:[%s123_s1] sm:$0xff]  ;;  %v16_v5 = vld [vmem:[%s124_s2 + $0x8] sm:$0xff]  ;;  %s77_s20 = smov [#allocation2]  }
   0x3   :  { %51 = vset.pattern.permute.xlu0 %v76_v1  ;;  %v15_v4 = vld [vmem:[%s124_s2] sm:$0xff]  ;;  %s41_s0 = sshll.u32 %s77_s20, 4  ;;  %s42_s0 = int_to_ptr.vmem [resolvable:$true] %s41_s0 }
   0x4   :  { %20 = vperm.xlu0 %51, %v17_v0   ;;  %s52_s1 = scalar_lea.vmem %s42_s0, 256  ;;  %p57_p1 = scmp.lt.s32.totalorder %s42_s0, %s42_s0 }
   0x5   :  { %p53_p0 = scmp.ne.s32.totalorder %s42_s0, %s52_s1  ;;  %p58_p2 = scmp.lt.s32.totalorder %s52_s1, %s52_s1 }
   0x7   :  { %p59_p3 = por %p58_p2, %p57_p1 }
   0x8   :  { %28 = vperm.xlu0 %51, %v25_v2  }
   0x9   :  { %p60_p4 = pnand %p59_p3, %p53_p0 }
  0x83   :  { %v21_v3 = vpop.permute.xlu0 %20 }
  0x84   :  { %v23_v6 = vmul.f32 %v21_v3, %v15_v4  ;;  %v24_v7 = vmul.f32 %v21_v3, %v16_v5 }
  0x87   :  { %v29_v8 = vpop.permute.xlu0 %28 }
  0x88   :  { %v31_v9 = vadd.f32 %v29_v8, %v23_v6  ;;  %v32_v10 = vadd.f32 %v29_v8, %v24_v7 }
  0x8a   :  { %33 = vst [vmem:[#allocation2] sm:$0xff] %v31_v9  ;;  %34 = vst [vmem:[#allocation2 + $0x8] sm:$0xff] %v32_v10 }
  0x8b   :  { %63 = shalt.err (!%p60_p4)
}
  0x8c   :  { %s64_s2 = scalar_lea.hbm %s125_s3, 256 }
  0x8d   :  { %p65_p5 = scmp.ne.s32.totalorder %s125_s3, %s64_s2  ;;  %p68_p6 = scmp.lt.u32.totalorder %s64_s2, %s125_s3 }
  0x8f   :  { %p70_p7 = pnand %p68_p6, %p65_p5 }
  0x91   :  { %73 = shalt.err (!%p70_p7)
}
  0x92   :  { %44 = dma.vmem_to_hbm [thread:$0]  %s42_s0, 256, %s125_s3, [#allocation3]  }
  0x93   :  { %74 = dma.done.wait [#allocation3], 256  }
  0x94   :  { %75 = vsyncadd [#allocation3], 4294967040 }
  0x95   :  { %48 = vsyncpa [#allocation3], 1 }

</bundles_post_ra>
